<compile_context>
chip_gen: v5e
topology: v5e:2x2
jax: 0.10.0
libtpu: 0.0.40
codegen_flags: <defaults>
</compile_context>

<pallas_src>
import math
import functools

import jax
import jax.numpy as jnp
from jax import lax
from jax.experimental import pallas as pl
from jax.experimental.pallas import tpu as pltpu


# ----------------------------- fused kernel -------------------------------- #

def _fused_mha_kernel(xq_ref, xk_ref, xv_ref, wqt_ref, wkt_ref, wvt_ref,
                      dmat_ref, out_ref, *, num_heads, head_dim):
    H, D = num_heads, head_dim
    L = xq_ref.shape[0]

    # --- Q/K/V projections. Weights are pre-transposed on the host and the
    #     1/sqrt(D) scaling is already folded into wqt, so these are plain
    #     "nn" MXU matmuls with f32 accumulation. ---
    qf = jnp.dot(xq_ref[...], wqt_ref[...], preferred_element_type=jnp.float32)  # (L, E)
    kf = jnp.dot(xk_ref[...], wkt_ref[...], preferred_element_type=jnp.float32)  # (L, E)
    vf = jnp.dot(xv_ref[...], wvt_ref[...], preferred_element_type=jnp.float32)  # (L, E)

    dm = dmat_ref[...]   # (H, H*L, L) constant 0/1 gather matrices

    def to_head_rows(full):
        # Realize the module's quirky row-major head split
        #   (L, E) --view--> (H*L, D),  head h = rows [h*L, (h+1)*L)
        # as a sum of 0/1 matmuls (exact; avoids unsupported in-kernel reshape):
        #   out[i, d] = full[i // H, (i % H) * D + d]
        acc = jnp.dot(dm[0], full[:, 0:D], preferred_element_type=jnp.float32)
        for g in range(1, H):
            acc = acc + jnp.dot(dm[g], full[:, g * D:(g + 1) * D],
                                preferred_element_type=jnp.float32)
        return acc                                                    # (H*L, D)

    q_r = to_head_rows(qf)
    k_r = to_head_rows(kf)
    v_r = to_head_rows(vf)

    nt = (((1,), (1,)), ((), ()))   # contract last dims of both operands (q @ k^T)

    # --- per-head attention, statically unrolled; write straight into the
    #     (L, E) output slab so the kernel output is already the final layout ---
    for h in range(H):
        qh = q_r[h * L:(h + 1) * L, :]        # (L, D)
        kh = k_r[h * L:(h + 1) * L, :]        # (L, D)
        vh = v_r[h * L:(h + 1) * L, :]        # (L, D)

        s = lax.dot_general(qh, kh, nt, preferred_element_type=jnp.float32)  # (L, L)
        s = s - jnp.max(s, axis=-1, keepdims=True)
        e = jnp.exp(s)
        # exact reciprocal keeps tight f32 agreement with the reference
        p = e * pl.reciprocal(jnp.sum(e, axis=-1, keepdims=True), approx=False)

        out_ref[:, h * D:(h + 1) * D] = jnp.dot(p, vh,
                                                preferred_element_type=jnp.float32)


# ------------------------------- wrapper ----------------------------------- #

@functools.partial(jax.jit, static_argnums=(6,))
def my_multihead_attention(query, key, value, wq, wk, wv, num_heads):
    bsz, L, E = query.shape
    assert bsz == 1, "reference module's final .view requires bsz == 1"
    H = num_heads
    D = E // H
    scaling = float(D) ** (-0.5)

    xq, xk, xv = query[0], key[0], value[0]        # (L, E)

    # Host-side (cheap XLA) weight prep: transpose for "nn" matmul and fold the
    # query scaling into Wq so the kernel never multiplies the (L, E) result.
    wqt = (wq * scaling).T
    wkt = wk.T
    wvt = wv.T

    # Constant 0/1 gather matrices implementing q.view(H, L, D) (row-major):
    #   dmat[g, i, l] = 1  iff  (i % H == g) and (i // H == l)
    i_idx = jnp.arange(H * L)
    dmat = ((i_idx[None, :, None] % H == jnp.arange(H)[:, None, None]) &
            (i_idx[None, :, None] // H == jnp.arange(L)[None, None, :])
            ).astype(jnp.float32)                  # (H, H*L, L)

    out = pl.pallas_call(
        functools.partial(_fused_mha_kernel, num_heads=H, head_dim=D),
        out_shape=jax.ShapeDtypeStruct((L, E), jnp.float32),
        grid=(1,),
        in_specs=[pl.BlockSpec((L, E), lambda i: (0, 0))] * 3
                 + [pl.BlockSpec((E, E), lambda i: (0, 0))] * 3
                 + [pl.BlockSpec((H, H * L, L), lambda i: (0, 0, 0))],
        out_specs=pl.BlockSpec((L, E), lambda i: (0, 0)),
        compiler_params=pltpu.CompilerParams(
            dimension_semantics=("arbitrary",)),   # single TC; nothing to shard
    )(xq, xk, xv, wqt, wkt, wvt, dmat)
    return out


# ------------------------------ reference ----------------------------------- #

def _ref_forward(query, key, value, wq, wk, wv, num_heads):
    bsz, tgt_len, embed_dim = query.shape
    head_dim = embed_dim // num_heads
    scaling = float(head_dim) ** (-0.5)
    q = jnp.einsum('ble,fe->blf', query, wq) * scaling
    k = jnp.einsum('ble,fe->blf', key, wk)
    v = jnp.einsum('ble,fe->blf', value, wv)
    q = q.reshape(bsz * num_heads, tgt_len, head_dim)
    k = k.reshape(bsz * num_heads, tgt_len, head_dim)
    v = v.reshape(bsz * num_heads, tgt_len, head_dim)
    w = jnp.einsum('bld,bmd->blm', q, k)
    w = jax.nn.softmax(w, axis=-1)
    o = jnp.einsum('blm,bmd->bld', w, v)
    return o.transpose(1, 0, 2).reshape(tgt_len, embed_dim)


# -------------------------------- main --------------------------------------- #

if __name__ == "__main__":
    in_feature = 32      # embed_dim
    num_heads = 4
    bsz, seq = 1, 8      # bsz must be 1 (see note above)

    key0 = jax.random.PRNGKey(0)
    k_q, k_k, k_v, k_wq, k_wk, k_wv, k_wo = jax.random.split(key0, 7)

    # xavier_uniform_ for the (E, E) projection weights
    bound = math.sqrt(6.0 / (in_feature + in_feature))
    wq = jax.random.uniform(k_wq, (in_feature, in_feature), jnp.float32, -bound, bound)
    wk = jax.random.uniform(k_wk, (in_feature, in_feature), jnp.float32, -bound, bound)
    wv = jax.random.uniform(k_wv, (in_feature, in_feature), jnp.float32, -bound, bound)
    # out_proj exists in __init__ but is never applied in the reference forward.
    w_out_unused = jax.random.uniform(k_wo, (in_feature, in_feature),
                                      jnp.float32, -bound, bound)

    query = jax.random.normal(k_q, (bsz, seq, in_feature), jnp.float32)
    key_t = jax.random.normal(k_k, (bsz, seq, in_feature), jnp.float32)
    value = jax.random.normal(k_v, (bsz, seq, in_feature), jnp.float32)

    out = my_multihead_attention(query, key_t, value, wq, wk, wv, num_heads)
    out = jax.block_until_ready(out)

    ref = _ref_forward(query, key_t, value, wq, wk, wv, num_heads)
    assert out.shape == (seq, in_feature)
    # small slack for the host-side scaling fold (scale-before vs scale-after rounding)
    assert jnp.allclose(out, ref, atol=1e-4, rtol=1e-4), "mismatch vs JAX reference"

    print("KERNEL_OK")
</pallas_src>

<mosaic_0001>
module attributes {stable_mosaic.version = 11 : i64} {
  func.func @_fused_mha_kernel(%arg0: i32, %arg1: memref<8x32xf32, #tpu.memory_space<vmem>>, %arg2: memref<8x32xf32, #tpu.memory_space<vmem>>, %arg3: memref<8x32xf32, #tpu.memory_space<vmem>>, %arg4: memref<32x32xf32, #tpu.memory_space<vmem>>, %arg5: memref<32x32xf32, #tpu.memory_space<vmem>>, %arg6: memref<32x32xf32, #tpu.memory_space<vmem>>, %arg7: memref<4x32x8xf32, #tpu.memory_space<vmem>>, %arg8: memref<8x32xf32, #tpu.memory_space<vmem>>) attributes {dimension_semantics = [#tpu.dimension_semantics<arbitrary>], iteration_bounds = array<i64: 1>, scalar_prefetch = 0 : i64, scratch_operands = 0 : i64, tpu.core_type = #tpu.core_type<tc>, window_params = [{pipeline_mode = #tpu.pipeline_mode<synchronous>, transform_indices = @transform_0, window_bounds = array<i64: 8, 32>}, {pipeline_mode = #tpu.pipeline_mode<synchronous>, transform_indices = @transform_1, window_bounds = array<i64: 8, 32>}, {pipeline_mode = #tpu.pipeline_mode<synchronous>, transform_indices = @transform_2, window_bounds = array<i64: 8, 32>}, {pipeline_mode = #tpu.pipeline_mode<synchronous>, transform_indices = @transform_3, window_bounds = array<i64: 32, 32>}, {pipeline_mode = #tpu.pipeline_mode<synchronous>, transform_indices = @transform_4, window_bounds = array<i64: 32, 32>}, {pipeline_mode = #tpu.pipeline_mode<synchronous>, transform_indices = @transform_5, window_bounds = array<i64: 32, 32>}, {pipeline_mode = #tpu.pipeline_mode<synchronous>, transform_indices = @transform_6, window_bounds = array<i64: 4, 32, 8>}, {pipeline_mode = #tpu.pipeline_mode<synchronous>, transform_indices = @transform_7, window_bounds = array<i64: 8, 32>}]} {
    %c0 = arith.constant 0 : index
    %c0_0 = arith.constant 0 : index
    %0 = vector.load %arg1[%c0, %c0_0] : memref<8x32xf32, #tpu.memory_space<vmem>>, vector<8x32xf32>
    %c0_1 = arith.constant 0 : index
    %c0_2 = arith.constant 0 : index
    %1 = vector.load %arg4[%c0_1, %c0_2] : memref<32x32xf32, #tpu.memory_space<vmem>>, vector<32x32xf32>
    %cst = arith.constant dense<0.000000e+00> : vector<8x32xf32>
    %2 = tpu.matmul %0, %1, %cst {dimension_numbers = #tpu.dot_dimension_numbers<[1], [0], [0], [1], [0, 0, 1, 1], [], []>} : vector<8x32xf32>, vector<32x32xf32>, vector<8x32xf32> -> vector<8x32xf32>
    %c0_3 = arith.constant 0 : index
    %c0_4 = arith.constant 0 : index
    %3 = vector.load %arg2[%c0_3, %c0_4] : memref<8x32xf32, #tpu.memory_space<vmem>>, vector<8x32xf32>
    %c0_5 = arith.constant 0 : index
    %c0_6 = arith.constant 0 : index
    %4 = vector.load %arg5[%c0_5, %c0_6] : memref<32x32xf32, #tpu.memory_space<vmem>>, vector<32x32xf32>
    %cst_7 = arith.constant dense<0.000000e+00> : vector<8x32xf32>
    %5 = tpu.matmul %3, %4, %cst_7 {dimension_numbers = #tpu.dot_dimension_numbers<[1], [0], [0], [1], [0, 0, 1, 1], [], []>} : vector<8x32xf32>, vector<32x32xf32>, vector<8x32xf32> -> vector<8x32xf32>
    %c0_8 = arith.constant 0 : index
    %c0_9 = arith.constant 0 : index
    %6 = vector.load %arg3[%c0_8, %c0_9] : memref<8x32xf32, #tpu.memory_space<vmem>>, vector<8x32xf32>
    %c0_10 = arith.constant 0 : index
    %c0_11 = arith.constant 0 : index
    %7 = vector.load %arg6[%c0_10, %c0_11] : memref<32x32xf32, #tpu.memory_space<vmem>>, vector<32x32xf32>
    %cst_12 = arith.constant dense<0.000000e+00> : vector<8x32xf32>
    %8 = tpu.matmul %6, %7, %cst_12 {dimension_numbers = #tpu.dot_dimension_numbers<[1], [0], [0], [1], [0, 0, 1, 1], [], []>} : vector<8x32xf32>, vector<32x32xf32>, vector<8x32xf32> -> vector<8x32xf32>
    %c0_13 = arith.constant 0 : index
    %c0_14 = arith.constant 0 : index
    %c0_15 = arith.constant 0 : index
    %9 = vector.load %arg7[%c0_13, %c0_14, %c0_15] : memref<4x32x8xf32, #tpu.memory_space<vmem>>, vector<4x32x8xf32>
    %10 = vector.extract_strided_slice %9 {offsets = [0, 0, 0], sizes = [1, 32, 8], strides = [1, 1, 1]} : vector<4x32x8xf32> to vector<1x32x8xf32>
    %11 = vector.shape_cast %10 : vector<1x32x8xf32> to vector<32x8xf32>
    %12 = vector.extract_strided_slice %2 {offsets = [0, 0], sizes = [8, 8], strides = [1, 1]} : vector<8x32xf32> to vector<8x8xf32>
    %cst_16 = arith.constant dense<0.000000e+00> : vector<32x8xf32>
    %13 = tpu.matmul %11, %12, %cst_16 {dimension_numbers = #tpu.dot_dimension_numbers<[1], [0], [0], [1], [0, 0, 1, 1], [], []>} : vector<32x8xf32>, vector<8x8xf32>, vector<32x8xf32> -> vector<32x8xf32>
    %14 = vector.extract_strided_slice %9 {offsets = [1, 0, 0], sizes = [1, 32, 8], strides = [1, 1, 1]} : vector<4x32x8xf32> to vector<1x32x8xf32>
    %15 = vector.shape_cast %14 : vector<1x32x8xf32> to vector<32x8xf32>
    %16 = vector.extract_strided_slice %2 {offsets = [0, 8], sizes = [8, 8], strides = [1, 1]} : vector<8x32xf32> to vector<8x8xf32>
    %cst_17 = arith.constant dense<0.000000e+00> : vector<32x8xf32>
    %17 = tpu.matmul %15, %16, %cst_17 {dimension_numbers = #tpu.dot_dimension_numbers<[1], [0], [0], [1], [0, 0, 1, 1], [], []>} : vector<32x8xf32>, vector<8x8xf32>, vector<32x8xf32> -> vector<32x8xf32>
    %18 = arith.addf %13, %17 : vector<32x8xf32>
    %19 = vector.extract_strided_slice %9 {offsets = [2, 0, 0], sizes = [1, 32, 8], strides = [1, 1, 1]} : vector<4x32x8xf32> to vector<1x32x8xf32>
    %20 = vector.shape_cast %19 : vector<1x32x8xf32> to vector<32x8xf32>
    %21 = vector.extract_strided_slice %2 {offsets = [0, 16], sizes = [8, 8], strides = [1, 1]} : vector<8x32xf32> to vector<8x8xf32>
    %cst_18 = arith.constant dense<0.000000e+00> : vector<32x8xf32>
    %22 = tpu.matmul %20, %21, %cst_18 {dimension_numbers = #tpu.dot_dimension_numbers<[1], [0], [0], [1], [0, 0, 1, 1], [], []>} : vector<32x8xf32>, vector<8x8xf32>, vector<32x8xf32> -> vector<32x8xf32>
    %23 = arith.addf %18, %22 : vector<32x8xf32>
    %24 = vector.extract_strided_slice %9 {offsets = [3, 0, 0], sizes = [1, 32, 8], strides = [1, 1, 1]} : vector<4x32x8xf32> to vector<1x32x8xf32>
    %25 = vector.shape_cast %24 : vector<1x32x8xf32> to vector<32x8xf32>
    %26 = vector.extract_strided_slice %2 {offsets = [0, 24], sizes = [8, 8], strides = [1, 1]} : vector<8x32xf32> to vector<8x8xf32>
    %cst_19 = arith.constant dense<0.000000e+00> : vector<32x8xf32>
    %27 = tpu.matmul %25, %26, %cst_19 {dimension_numbers = #tpu.dot_dimension_numbers<[1], [0], [0], [1], [0, 0, 1, 1], [], []>} : vector<32x8xf32>, vector<8x8xf32>, vector<32x8xf32> -> vector<32x8xf32>
    %28 = arith.addf %23, %27 : vector<32x8xf32>
    %29 = vector.extract_strided_slice %9 {offsets = [0, 0, 0], sizes = [1, 32, 8], strides = [1, 1, 1]} : vector<4x32x8xf32> to vector<1x32x8xf32>
    %30 = vector.shape_cast %29 : vector<1x32x8xf32> to vector<32x8xf32>
    %31 = vector.extract_strided_slice %5 {offsets = [0, 0], sizes = [8, 8], strides = [1, 1]} : vector<8x32xf32> to vector<8x8xf32>
    %cst_20 = arith.constant dense<0.000000e+00> : vector<32x8xf32>
    %32 = tpu.matmul %30, %31, %cst_20 {dimension_numbers = #tpu.dot_dimension_numbers<[1], [0], [0], [1], [0, 0, 1, 1], [], []>} : vector<32x8xf32>, vector<8x8xf32>, vector<32x8xf32> -> vector<32x8xf32>
    %33 = vector.extract_strided_slice %9 {offsets = [1, 0, 0], sizes = [1, 32, 8], strides = [1, 1, 1]} : vector<4x32x8xf32> to vector<1x32x8xf32>
    %34 = vector.shape_cast %33 : vector<1x32x8xf32> to vector<32x8xf32>
    %35 = vector.extract_strided_slice %5 {offsets = [0, 8], sizes = [8, 8], strides = [1, 1]} : vector<8x32xf32> to vector<8x8xf32>
    %cst_21 = arith.constant dense<0.000000e+00> : vector<32x8xf32>
    %36 = tpu.matmul %34, %35, %cst_21 {dimension_numbers = #tpu.dot_dimension_numbers<[1], [0], [0], [1], [0, 0, 1, 1], [], []>} : vector<32x8xf32>, vector<8x8xf32>, vector<32x8xf32> -> vector<32x8xf32>
    %37 = arith.addf %32, %36 : vector<32x8xf32>
    %38 = vector.extract_strided_slice %9 {offsets = [2, 0, 0], sizes = [1, 32, 8], strides = [1, 1, 1]} : vector<4x32x8xf32> to vector<1x32x8xf32>
    %39 = vector.shape_cast %38 : vector<1x32x8xf32> to vector<32x8xf32>
    %40 = vector.extract_strided_slice %5 {offsets = [0, 16], sizes = [8, 8], strides = [1, 1]} : vector<8x32xf32> to vector<8x8xf32>
    %cst_22 = arith.constant dense<0.000000e+00> : vector<32x8xf32>
    %41 = tpu.matmul %39, %40, %cst_22 {dimension_numbers = #tpu.dot_dimension_numbers<[1], [0], [0], [1], [0, 0, 1, 1], [], []>} : vector<32x8xf32>, vector<8x8xf32>, vector<32x8xf32> -> vector<32x8xf32>
    %42 = arith.addf %37, %41 : vector<32x8xf32>
    %43 = vector.extract_strided_slice %9 {offsets = [3, 0, 0], sizes = [1, 32, 8], strides = [1, 1, 1]} : vector<4x32x8xf32> to vector<1x32x8xf32>
    %44 = vector.shape_cast %43 : vector<1x32x8xf32> to vector<32x8xf32>
    %45 = vector.extract_strided_slice %5 {offsets = [0, 24], sizes = [8, 8], strides = [1, 1]} : vector<8x32xf32> to vector<8x8xf32>
    %cst_23 = arith.constant dense<0.000000e+00> : vector<32x8xf32>
    %46 = tpu.matmul %44, %45, %cst_23 {dimension_numbers = #tpu.dot_dimension_numbers<[1], [0], [0], [1], [0, 0, 1, 1], [], []>} : vector<32x8xf32>, vector<8x8xf32>, vector<32x8xf32> -> vector<32x8xf32>
    %47 = arith.addf %42, %46 : vector<32x8xf32>
    %48 = vector.extract_strided_slice %9 {offsets = [0, 0, 0], sizes = [1, 32, 8], strides = [1, 1, 1]} : vector<4x32x8xf32> to vector<1x32x8xf32>
    %49 = vector.shape_cast %48 : vector<1x32x8xf32> to vector<32x8xf32>
    %50 = vector.extract_strided_slice %8 {offsets = [0, 0], sizes = [8, 8], strides = [1, 1]} : vector<8x32xf32> to vector<8x8xf32>
    %cst_24 = arith.constant dense<0.000000e+00> : vector<32x8xf32>
    %51 = tpu.matmul %49, %50, %cst_24 {dimension_numbers = #tpu.dot_dimension_numbers<[1], [0], [0], [1], [0, 0, 1, 1], [], []>} : vector<32x8xf32>, vector<8x8xf32>, vector<32x8xf32> -> vector<32x8xf32>
    %52 = vector.extract_strided_slice %9 {offsets = [1, 0, 0], sizes = [1, 32, 8], strides = [1, 1, 1]} : vector<4x32x8xf32> to vector<1x32x8xf32>
    %53 = vector.shape_cast %52 : vector<1x32x8xf32> to vector<32x8xf32>
    %54 = vector.extract_strided_slice %8 {offsets = [0, 8], sizes = [8, 8], strides = [1, 1]} : vector<8x32xf32> to vector<8x8xf32>
    %cst_25 = arith.constant dense<0.000000e+00> : vector<32x8xf32>
    %55 = tpu.matmul %53, %54, %cst_25 {dimension_numbers = #tpu.dot_dimension_numbers<[1], [0], [0], [1], [0, 0, 1, 1], [], []>} : vector<32x8xf32>, vector<8x8xf32>, vector<32x8xf32> -> vector<32x8xf32>
    %56 = arith.addf %51, %55 : vector<32x8xf32>
    %57 = vector.extract_strided_slice %9 {offsets = [2, 0, 0], sizes = [1, 32, 8], strides = [1, 1, 1]} : vector<4x32x8xf32> to vector<1x32x8xf32>
    %58 = vector.shape_cast %57 : vector<1x32x8xf32> to vector<32x8xf32>
    %59 = vector.extract_strided_slice %8 {offsets = [0, 16], sizes = [8, 8], strides = [1, 1]} : vector<8x32xf32> to vector<8x8xf32>
    %cst_26 = arith.constant dense<0.000000e+00> : vector<32x8xf32>
    %60 = tpu.matmul %58, %59, %cst_26 {dimension_numbers = #tpu.dot_dimension_numbers<[1], [0], [0], [1], [0, 0, 1, 1], [], []>} : vector<32x8xf32>, vector<8x8xf32>, vector<32x8xf32> -> vector<32x8xf32>
    %61 = arith.addf %56, %60 : vector<32x8xf32>
    %62 = vector.extract_strided_slice %9 {offsets = [3, 0, 0], sizes = [1, 32, 8], strides = [1, 1, 1]} : vector<4x32x8xf32> to vector<1x32x8xf32>
    %63 = vector.shape_cast %62 : vector<1x32x8xf32> to vector<32x8xf32>
    %64 = vector.extract_strided_slice %8 {offsets = [0, 24], sizes = [8, 8], strides = [1, 1]} : vector<8x32xf32> to vector<8x8xf32>
    %cst_27 = arith.constant dense<0.000000e+00> : vector<32x8xf32>
    %65 = tpu.matmul %63, %64, %cst_27 {dimension_numbers = #tpu.dot_dimension_numbers<[1], [0], [0], [1], [0, 0, 1, 1], [], []>} : vector<32x8xf32>, vector<8x8xf32>, vector<32x8xf32> -> vector<32x8xf32>
    %66 = arith.addf %61, %65 : vector<32x8xf32>
    %67 = vector.extract_strided_slice %28 {offsets = [0, 0], sizes = [8, 8], strides = [1, 1]} : vector<32x8xf32> to vector<8x8xf32>
    %68 = vector.extract_strided_slice %47 {offsets = [0, 0], sizes = [8, 8], strides = [1, 1]} : vector<32x8xf32> to vector<8x8xf32>
    %69 = vector.extract_strided_slice %66 {offsets = [0, 0], sizes = [8, 8], strides = [1, 1]} : vector<32x8xf32> to vector<8x8xf32>
    %cst_28 = arith.constant dense<0.000000e+00> : vector<8x8xf32>
    %70 = tpu.matmul %67, %68, %cst_28 {dimension_numbers = #tpu.dot_dimension_numbers<[1], [1], [0], [0], [0, 0, 1, 0], [], []>} : vector<8x8xf32>, vector<8x8xf32>, vector<8x8xf32> -> vector<8x8xf32>
    %cst_29 = arith.constant dense<0xFF800000> : vector<8xf32>
    %71 = vector.multi_reduction <maximumf>, %70, %cst_29 [1] : vector<8x8xf32> to vector<8xf32>
    %72 = vector.shape_cast %71 : vector<8xf32> to vector<8x1xf32>
    %73 = vector.broadcast %72 : vector<8x1xf32> to vector<8x8xf32>
    %74 = arith.subf %70, %73 : vector<8x8xf32>
    %75 = math.exp %74 : vector<8x8xf32>
    %cst_30 = arith.constant dense<0.000000e+00> : vector<8xf32>
    %76 = vector.multi_reduction <add>, %75, %cst_30 [1] : vector<8x8xf32> to vector<8xf32>
    %77 = vector.shape_cast %76 : vector<8xf32> to vector<8x1xf32>
    %78 = tpu.reciprocal %77 : vector<8x1xf32> -> vector<8x1xf32>
    %79 = vector.broadcast %78 : vector<8x1xf32> to vector<8x8xf32>
    %80 = arith.mulf %75, %79 : vector<8x8xf32>
    %cst_31 = arith.constant dense<0.000000e+00> : vector<8x8xf32>
    %81 = tpu.matmul %80, %69, %cst_31 {dimension_numbers = #tpu.dot_dimension_numbers<[1], [0], [0], [1], [0, 0, 1, 1], [], []>} : vector<8x8xf32>, vector<8x8xf32>, vector<8x8xf32> -> vector<8x8xf32>
    %c0_32 = arith.constant 0 : index
    %c0_33 = arith.constant 0 : index
    %82 = vector.load %arg8[%c0_32, %c0_33] : memref<8x32xf32, #tpu.memory_space<vmem>>, vector<8x8xf32>
    tpu.vector_store %arg8[%c0_32, %c0_33], %81 {strides = array<i32>} : memref<8x32xf32, #tpu.memory_space<vmem>>, vector<8x8xf32>,
    %83 = vector.extract_strided_slice %28 {offsets = [8, 0], sizes = [8, 8], strides = [1, 1]} : vector<32x8xf32> to vector<8x8xf32>
    %84 = vector.extract_strided_slice %47 {offsets = [8, 0], sizes = [8, 8], strides = [1, 1]} : vector<32x8xf32> to vector<8x8xf32>
    %85 = vector.extract_strided_slice %66 {offsets = [8, 0], sizes = [8, 8], strides = [1, 1]} : vector<32x8xf32> to vector<8x8xf32>
    %cst_34 = arith.constant dense<0.000000e+00> : vector<8x8xf32>
    %86 = tpu.matmul %83, %84, %cst_34 {dimension_numbers = #tpu.dot_dimension_numbers<[1], [1], [0], [0], [0, 0, 1, 0], [], []>} : vector<8x8xf32>, vector<8x8xf32>, vector<8x8xf32> -> vector<8x8xf32>
    %cst_35 = arith.constant dense<0xFF800000> : vector<8xf32>
    %87 = vector.multi_reduction <maximumf>, %86, %cst_35 [1] : vector<8x8xf32> to vector<8xf32>
    %88 = vector.shape_cast %87 : vector<8xf32> to vector<8x1xf32>
    %89 = vector.broadcast %88 : vector<8x1xf32> to vector<8x8xf32>
    %90 = arith.subf %86, %89 : vector<8x8xf32>
    %91 = math.exp %90 : vector<8x8xf32>
    %cst_36 = arith.constant dense<0.000000e+00> : vector<8xf32>
    %92 = vector.multi_reduction <add>, %91, %cst_36 [1] : vector<8x8xf32> to vector<8xf32>
    %93 = vector.shape_cast %92 : vector<8xf32> to vector<8x1xf32>
    %94 = tpu.reciprocal %93 : vector<8x1xf32> -> vector<8x1xf32>
    %95 = vector.broadcast %94 : vector<8x1xf32> to vector<8x8xf32>
    %96 = arith.mulf %91, %95 : vector<8x8xf32>
    %cst_37 = arith.constant dense<0.000000e+00> : vector<8x8xf32>
    %97 = tpu.matmul %96, %85, %cst_37 {dimension_numbers = #tpu.dot_dimension_numbers<[1], [0], [0], [1], [0, 0, 1, 1], [], []>} : vector<8x8xf32>, vector<8x8xf32>, vector<8x8xf32> -> vector<8x8xf32>
    %c0_38 = arith.constant 0 : index
    %c8 = arith.constant 8 : index
    %98 = vector.load %arg8[%c0_38, %c8] : memref<8x32xf32, #tpu.memory_space<vmem>>, vector<8x8xf32>
    tpu.vector_store %arg8[%c0_38, %c8], %97 {strides = array<i32>} : memref<8x32xf32, #tpu.memory_space<vmem>>, vector<8x8xf32>,
    %99 = vector.extract_strided_slice %28 {offsets = [16, 0], sizes = [8, 8], strides = [1, 1]} : vector<32x8xf32> to vector<8x8xf32>
    %100 = vector.extract_strided_slice %47 {offsets = [16, 0], sizes = [8, 8], strides = [1, 1]} : vector<32x8xf32> to vector<8x8xf32>
    %101 = vector.extract_strided_slice %66 {offsets = [16, 0], sizes = [8, 8], strides = [1, 1]} : vector<32x8xf32> to vector<8x8xf32>
    %cst_39 = arith.constant dense<0.000000e+00> : vector<8x8xf32>
    %102 = tpu.matmul %99, %100, %cst_39 {dimension_numbers = #tpu.dot_dimension_numbers<[1], [1], [0], [0], [0, 0, 1, 0], [], []>} : vector<8x8xf32>, vector<8x8xf32>, vector<8x8xf32> -> vector<8x8xf32>
    %cst_40 = arith.constant dense<0xFF800000> : vector<8xf32>
    %103 = vector.multi_reduction <maximumf>, %102, %cst_40 [1] : vector<8x8xf32> to vector<8xf32>
    %104 = vector.shape_cast %103 : vector<8xf32> to vector<8x1xf32>
    %105 = vector.broadcast %104 : vector<8x1xf32> to vector<8x8xf32>
    %106 = arith.subf %102, %105 : vector<8x8xf32>
    %107 = math.exp %106 : vector<8x8xf32>
    %cst_41 = arith.constant dense<0.000000e+00> : vector<8xf32>
    %108 = vector.multi_reduction <add>, %107, %cst_41 [1] : vector<8x8xf32> to vector<8xf32>
    %109 = vector.shape_cast %108 : vector<8xf32> to vector<8x1xf32>
    %110 = tpu.reciprocal %109 : vector<8x1xf32> -> vector<8x1xf32>
    %111 = vector.broadcast %110 : vector<8x1xf32> to vector<8x8xf32>
    %112 = arith.mulf %107, %111 : vector<8x8xf32>
    %cst_42 = arith.constant dense<0.000000e+00> : vector<8x8xf32>
    %113 = tpu.matmul %112, %101, %cst_42 {dimension_numbers = #tpu.dot_dimension_numbers<[1], [0], [0], [1], [0, 0, 1, 1], [], []>} : vector<8x8xf32>, vector<8x8xf32>, vector<8x8xf32> -> vector<8x8xf32>
    %c0_43 = arith.constant 0 : index
    %c16 = arith.constant 16 : index
    %114 = vector.load %arg8[%c0_43, %c16] : memref<8x32xf32, #tpu.memory_space<vmem>>, vector<8x8xf32>
    tpu.vector_store %arg8[%c0_43, %c16], %113 {strides = array<i32>} : memref<8x32xf32, #tpu.memory_space<vmem>>, vector<8x8xf32>,
    %115 = vector.extract_strided_slice %28 {offsets = [24, 0], sizes = [8, 8], strides = [1, 1]} : vector<32x8xf32> to vector<8x8xf32>
    %116 = vector.extract_strided_slice %47 {offsets = [24, 0], sizes = [8, 8], strides = [1, 1]} : vector<32x8xf32> to vector<8x8xf32>
    %117 = vector.extract_strided_slice %66 {offsets = [24, 0], sizes = [8, 8], strides = [1, 1]} : vector<32x8xf32> to vector<8x8xf32>
    %cst_44 = arith.constant dense<0.000000e+00> : vector<8x8xf32>
    %118 = tpu.matmul %115, %116, %cst_44 {dimension_numbers = #tpu.dot_dimension_numbers<[1], [1], [0], [0], [0, 0, 1, 0], [], []>} : vector<8x8xf32>, vector<8x8xf32>, vector<8x8xf32> -> vector<8x8xf32>
    %cst_45 = arith.constant dense<0xFF800000> : vector<8xf32>
    %119 = vector.multi_reduction <maximumf>, %118, %cst_45 [1] : vector<8x8xf32> to vector<8xf32>
    %120 = vector.shape_cast %119 : vector<8xf32> to vector<8x1xf32>
    %121 = vector.broadcast %120 : vector<8x1xf32> to vector<8x8xf32>
    %122 = arith.subf %118, %121 : vector<8x8xf32>
    %123 = math.exp %122 : vector<8x8xf32>
    %cst_46 = arith.constant dense<0.000000e+00> : vector<8xf32>
    %124 = vector.multi_reduction <add>, %123, %cst_46 [1] : vector<8x8xf32> to vector<8xf32>
    %125 = vector.shape_cast %124 : vector<8xf32> to vector<8x1xf32>
    %126 = tpu.reciprocal %125 : vector<8x1xf32> -> vector<8x1xf32>
    %127 = vector.broadcast %126 : vector<8x1xf32> to vector<8x8xf32>
    %128 = arith.mulf %123, %127 : vector<8x8xf32>
    %cst_47 = arith.constant dense<0.000000e+00> : vector<8x8xf32>
    %129 = tpu.matmul %128, %117, %cst_47 {dimension_numbers = #tpu.dot_dimension_numbers<[1], [0], [0], [1], [0, 0, 1, 1], [], []>} : vector<8x8xf32>, vector<8x8xf32>, vector<8x8xf32> -> vector<8x8xf32>
    %c0_48 = arith.constant 0 : index
    %c24 = arith.constant 24 : index
    %130 = vector.load %arg8[%c0_48, %c24] : memref<8x32xf32, #tpu.memory_space<vmem>>, vector<8x8xf32>
    tpu.vector_store %arg8[%c0_48, %c24], %129 {strides = array<i32>} : memref<8x32xf32, #tpu.memory_space<vmem>>, vector<8x8xf32>,
    return
  }
  func.func @transform_0(%arg0: i32) -> (i32, i32) {
    %c0_i32 = arith.constant 0 : i32
    %c0_i32_0 = arith.constant 0 : i32
    %c0_i32_1 = arith.constant 0 : i32
    return %c0_i32, %c0_i32_0 : i32, i32
  }
  func.func @transform_1(%arg0: i32) -> (i32, i32) {
    %c0_i32 = arith.constant 0 : i32
    %c0_i32_0 = arith.constant 0 : i32
    %c0_i32_1 = arith.constant 0 : i32
    return %c0_i32, %c0_i32_0 : i32, i32
  }
  func.func @transform_2(%arg0: i32) -> (i32, i32) {
    %c0_i32 = arith.constant 0 : i32
    %c0_i32_0 = arith.constant 0 : i32
    %c0_i32_1 = arith.constant 0 : i32
    return %c0_i32, %c0_i32_0 : i32, i32
  }
  func.func @transform_3(%arg0: i32) -> (i32, i32) {
    %c0_i32 = arith.constant 0 : i32
    %c0_i32_0 = arith.constant 0 : i32
    %c0_i32_1 = arith.constant 0 : i32
    return %c0_i32, %c0_i32_0 : i32, i32
  }
  func.func @transform_4(%arg0: i32) -> (i32, i32) {
    %c0_i32 = arith.constant 0 : i32
    %c0_i32_0 = arith.constant 0 : i32
    %c0_i32_1 = arith.constant 0 : i32
    return %c0_i32, %c0_i32_0 : i32, i32
  }
  func.func @transform_5(%arg0: i32) -> (i32, i32) {
    %c0_i32 = arith.constant 0 : i32
    %c0_i32_0 = arith.constant 0 : i32
    %c0_i32_1 = arith.constant 0 : i32
    return %c0_i32, %c0_i32_0 : i32, i32
  }
  func.func @transform_6(%arg0: i32) -> (i32, i32, i32) {
    %c0_i32 = arith.constant 0 : i32
    %c0_i32_0 = arith.constant 0 : i32
    %c0_i32_1 = arith.constant 0 : i32
    %c0_i32_2 = arith.constant 0 : i32
    return %c0_i32, %c0_i32_0, %c0_i32_1 : i32, i32, i32
  }
  func.func @transform_7(%arg0: i32) -> (i32, i32) {
    %c0_i32 = arith.constant 0 : i32
    %c0_i32_0 = arith.constant 0 : i32
    %c0_i32_1 = arith.constant 0 : i32
    return %c0_i32, %c0_i32_0 : i32, i32
  }
}

</mosaic_0001>

<bundles_post_ra>
// kernel: my_multihead_attention.1
= control target key start
LH: loop header
LB: loop body
LE: loop exit
PB: predicated region body
PF: predicated region fallthrough
CT: control target
= control target key end

     0   :  { %s1246_s0 = inlined_call_operand.vmem [shape: f32[8,32], index: 0, kind: input, shape index: {}]   ;;  %s1247_s1 = inlined_call_operand.vmem [shape: f32[8,32], index: 1, kind: input, shape index: {}]   ;;  %s1248_s2 = inlined_call_operand.vmem [shape: f32[8,32], index: 2, kind: input, shape index: {}]   ;;  %s1249_s3 = inlined_call_operand.vmem [shape: f32[32,32], index: 3, kind: input, shape index: {}]   ;;  %s1250_s4 = inlined_call_operand.vmem [shape: f32[32,32], index: 4, kind: input, shape index: {}]   ;;  %s1251_s5 = inlined_call_operand.vmem [shape: f32[32,32], index: 5, kind: input, shape index: {}]   ;;  %s1252_s6 = inlined_call_operand.vmem [shape: f32[4,32,8], index: 6, kind: input, shape index: {}]   ;;  %s1253_s7 = inlined_call_operand.hbm [shape: f32[8,32], index: 7, kind: output, shape index: {}]  }
   0x1   :  { %v31_v0 = vld [vmem:[%s1249_s3 + $0x18] sm:$0xff]  ;;  %v30_v1 = vld [vmem:[%s1249_s3 + $0x10] sm:$0xff]  ;;  %v29_v3 = vld [vmem:[%s1249_s3 + $0x8] sm:$0xff] }
   0x2   :  { %48 = vmatpush.msra.mxu0 %v31_v0  ;;  %v60_v2 = vld [vmem:[%s1250_s4 + $0x18] sm:$0xff]  ;;  %v59_v4 = vld [vmem:[%s1250_s4 + $0x10] sm:$0xff]  ;;  %v58_v5 = vld [vmem:[%s1250_s4 + $0x8] sm:$0xff] }
   0x3   :  { %76 = vmatpush.msra.mxu1 %v60_v2 }
   0x4   :  { %49 = vmatpush.msra.mxu0 %v30_v1 }
   0x5   :  { %12 = vsyncpa [#allocation3], 0  ;;  %v28_v6 = vld [vmem:[%s1249_s3] sm:$0xff]  ;;  %77 = vmatpush.msra.mxu1 %v59_v4  ;;  %vm32_vm0 = vcmask 261120   ;;  %v88_v10 = vld [vmem:[%s1251_s5 + $0x18] sm:$0xff]  ;;  %s1018_s27 = smov 112  }
   0x6   :  { %50 = vmatpush.msra.mxu0 %v29_v3  ;;  %v27_v7 = vld [vmem:[%s1246_s0] sm:$0xff]  ;;  %v87_v11 = vld [vmem:[%s1251_s5 + $0x10] sm:$0xff]  ;;  %104 = vmatpush.msra.mxu2 %v88_v10  ;;  %v86_v12 = vld [vmem:[%s1251_s5 + $0x8] sm:$0xff]  ;;  %s1019_s28 = smov 120   ;;  %s1020_s29 = smov 104   ;;  %vm132_vm1 = vcmask 64512  }
   0x7   :  { %v57_v8 = vld [vmem:[%s1250_s4] sm:$0xff]  ;;  %78 = vmatpush.msra.mxu1 %v58_v5  ;;  %v113_v18 = vld [vmem:[%s1252_s6 + $0x8] sm:$0xff]  ;;  %v114_v20 = vld [vmem:[%s1252_s6 + $0x10] sm:$0xff]  ;;  %s1022_s8 = smov 16   ;;  %s1023_s9 = smov 24  }
   0x8   :  { %v56_v9 = vld [vmem:[%s1247_s1] sm:$0xff]  ;;  %51 = vmatpush.msra.mxu0 %v28_v6  ;;  %105 = vmatpush.msra.mxu2 %v87_v11  ;;  %v115_v27 = vld [vmem:[%s1252_s6 + $0x18] sm:$0xff]  ;;  %v117_v29 = vld [vmem:[%s1252_s6 + $0x28] sm:$0xff]  ;;  %s1024_s10 = smov [#allocation2]   ;;  %s897_s14 = sshll.u32 %s1253_s7, 4  ;;  %s898_s14 = int_to_ptr.hbm [resolvable:$true] %s897_s14 }
   0x9   :  { %906 = vmatmul.msk.f32.vlgmr.msra.gmra.mxu0 %vm32_vm0, %v27_v7  ;;  %79 = vmatpush.msra.mxu1 %v57_v8  ;;  %v85_v13 = vld [vmem:[%s1251_s5] sm:$0xff]  ;;  %v121_v31 = vld [vmem:[%s1252_s6 + $0x48] sm:$0xff]  ;;  %v118_v34 = vld [vmem:[%s1252_s6 + $0x30] sm:$0xff]  ;;  %s895_s11 = sshll.u32 %s1024_s10, 4  ;;  %s896_s11 = int_to_ptr.vmem [resolvable:$true] %s895_s11 }
   0xa   :  { %907 = vmatmul.msk.f32.vlgmr.msra.gmra.mxu1 %vm32_vm0, %v56_v9  ;;  %106 = vmatpush.msra.mxu2 %v86_v12  ;;  %v84_v14 = vld [vmem:[%s1248_s2] sm:$0xff]  ;;  %v125_v33 = vld [vmem:[%s1252_s6 + $0x68] sm:$0xff]  ;;  %v122_v35 = vld [vmem:[%s1252_s6 + $0x50] sm:$0xff] }
   0xb   :  { %v112_v17 = vld [vmem:[%s1252_s6] sm:$0xff]  ;;  %v126_v36 = vld [vmem:[%s1252_s6 + $0x70] sm:$0xff]  ;;  %v119_v37 = vld [vmem:[%s1252_s6 + $0x38] sm:$0xff] }
   0xc   :  { %107 = vmatpush.msra.mxu2 %v85_v13  ;;  %v1128_v22 = vld [vmem:[%s1252_s6 + $0x20] sm:$0xff]  ;;  %v123_v38 = vld [vmem:[%s1252_s6 + $0x58] sm:$0xff] }
   0xd   :  { %908 = vmatmul.msk.f32.vlgmr.msra.gmra.mxu2 %vm32_vm0, %v84_v14  ;;  %v120_v26 = vld [vmem:[%s1252_s6 + $0x40] sm:$0xff]  ;;  %v127_v39 = vld [vmem:[%s1252_s6 + $0x78] sm:$0xff] }
   0xe   :  { %v124_v28 = vld [vmem:[%s1252_s6 + $0x60] sm:$0xff]  ;;  %s1021_s6 = smov 8  }
  0x86   :  { %v53_v15 = vpop.f32.mrf.mxu0 }
  0x87   :  { %215 = vrot.lane.b32.xlu1 %v53_v15, %s1018_s27  ;;  %129 = vrot.lane.b32.xlu0 %v53_v15, %s1019_s28  ;;  %v81_v16 = vpop.f32.mrf.mxu1 }
  0x88   :  { %201 = vmatpush.msrb.mxu0 %v53_v15  ;;  %409 = vrot.lane.b32.xlu2 %v81_v16, %s1020_s29 }
  0x89   :  { %913 = vmatmul.msk.f32.vlgmr.msrb.gmra.mxu0 %vm132_vm1, %v112_v17 }
  0x8a   :  { %359 = vmatpush.msra.mxu0 %v81_v16 }
  0x8f   :  { %263 = vrot.lane.b32.xlu0 %v53_v15, %s1020_s29  ;;  %312 = vrot.lane.b32.xlu1 %v81_v16, %s1019_s28 }
  0x90   :  { %373 = vrot.lane.b32.xlu2 %v81_v16, %s1018_s27  ;;  %v109_v21 = vpop.f32.mrf.mxu2 }
  0x91   :  { %914 = vmatmul.msk.f32.gmra.mxu0 %vm132_vm1, %v113_v18 }
  0x92   :  { %493 = vmatpush.msrb.mxu0 %v109_v21 }
  0x97   :  { %446 = vrot.lane.b32.xlu0 %v109_v21, %s1019_s28  ;;  %543 = vrot.lane.b32.xlu1 %v109_v21, %s1020_s29 }
  0x98   :  { %507 = vrot.lane.b32.xlu2 %v109_v21, %s1018_s27 }
  0x99   :  { %915 = vmatmul.msk.f32.gmra.mxu0 %vm132_vm1, %v114_v20 }
  0xa1   :  { %916 = vmatmul.msk.f32.gmra.mxu0 %vm132_vm1, %v115_v27 }
  0xa9   :  { %929 = vmatmul.msk.f32.vlgmr.msra.gmra.mxu0 %vm132_vm1, %v112_v17 }
  0xb1   :  { %930 = vmatmul.msk.f32.gmra.mxu0 %vm132_vm1, %v113_v18 }
  0xb9   :  { %931 = vmatmul.msk.f32.gmra.mxu0 %vm132_vm1, %v114_v20 }
  0xc1   :  { %932 = vmatmul.msk.f32.gmra.mxu0 %vm132_vm1, %v115_v27 }
  0xc9   :  { %945 = vmatmul.msk.f32.vlgmr.msrb.gmra.mxu0 %vm132_vm1, %v112_v17 }
  0xd1   :  { %946 = vmatmul.msk.f32.gmra.mxu0 %vm132_vm1, %v113_v18 }
  0xd9   :  { %947 = vmatmul.msk.f32.gmra.mxu0 %vm132_vm1, %v114_v20 }
  0xe1   :  { %948 = vmatmul.msk.f32.gmra.mxu0 %vm132_vm1, %v115_v27 }
  0xe2   :  { %v410_v19 = vpop.permute.xlu2 %409 }
  0xea   :  { %v374_v23 = vpop.permute.xlu2 %373 }
  0xf2   :  { %v508_v40 = vpop.permute.xlu2 %507 }
  0xf9   :  { %v216_v24 = vpop.permute.xlu1 %215  ;;  %v130_v25 = vpop.permute.xlu0 %129 }
  0xfa   :  { %160 = vmatpush.msra.mxu3 %v130_v25  ;;  %245 = vmatpush.msrb.mxu1 %v216_v24 }
  0xfb   :  { %909 = vmatmul.msk.f32.vlgmr.msra.gmra.mxu3 %vm132_vm1, %v1128_v22  ;;  %917 = vmatmul.msk.f32.vlgmr.msrb.gmra.mxu1 %vm132_vm1, %v120_v26 }
  0xfc   :  { %391 = vmatpush.msra.mxu1 %v374_v23 }
  0xfe   :  { %525 = vmatpush.msrb.mxu1 %v508_v40 }
 0x101   :  { %v264_v30 = vpop.permute.xlu0 %263  ;;  %v313_v32 = vpop.permute.xlu1 %312 }
 0x102   :  { %293 = vmatpush.msrb.mxu2 %v264_v30  ;;  %330 = vmatpush.msrb.mxu3 %v313_v32 }
 0x103   :  { %921 = vmatmul.msk.f32.vlgmr.msrb.gmra.mxu2 %vm132_vm1, %v124_v28  ;;  %910 = vmatmul.msk.f32.gmra.mxu3 %vm132_vm1, %v117_v29 }
 0x104   :  { %427 = vmatpush.msra.mxu2 %v410_v19  ;;  %918 = vmatmul.msk.f32.gmra.mxu1 %vm132_vm1, %v121_v31 }
 0x106   :  { %v203_v42 = vpop.f32.mrf.mxu0 }
 0x109   :  { %v447_v41 = vpop.permute.xlu0 %446  ;;  %v544_v44 = vpop.permute.xlu1 %543 }
 0x10a   :  { %464 = vmatpush.msra.mxu3 %v447_v41  ;;  %561 = vmatpush.msrb.mxu2 %v544_v44 }
 0x10b   :  { %922 = vmatmul.msk.f32.gmra.mxu2 %vm132_vm1, %v125_v33  ;;  %911 = vmatmul.msk.f32.gmra.mxu3 %vm132_vm1, %v118_v34 }
 0x10c   :  { %919 = vmatmul.msk.f32.gmra.mxu1 %vm132_vm1, %v122_v35 }
 0x10e   :  { %v206_v43 = vpop.f32.mrf.mxu0 }
 0x113   :  { %923 = vmatmul.msk.f32.gmra.mxu2 %vm132_vm1, %v126_v36  ;;  %912 = vmatmul.msk.f32.gmra.mxu3 %vm132_vm1, %v119_v37 }
 0x114   :  { %920 = vmatmul.msk.f32.gmra.mxu1 %vm132_vm1, %v123_v38 }
 0x116   :  { %v209_v48 = vpop.f32.mrf.mxu0 }
 0x11b   :  { %924 = vmatmul.msk.f32.gmra.mxu2 %vm132_vm1, %v127_v39  ;;  %925 = vmatmul.msk.f32.vlgmr.msrb.gmra.mxu3 %vm132_vm1, %v1128_v22 }
 0x11c   :  { %933 = vmatmul.msk.f32.vlgmr.msra.gmra.mxu1 %vm132_vm1, %v120_v26 }
 0x11e   :  { %v212_v52 = vpop.f32.mrf.mxu0 }
 0x123   :  { %937 = vmatmul.msk.f32.vlgmr.msra.gmra.mxu2 %vm132_vm1, %v124_v28  ;;  %926 = vmatmul.msk.f32.gmra.mxu3 %vm132_vm1, %v117_v29 }
 0x124   :  { %934 = vmatmul.msk.f32.gmra.mxu1 %vm132_vm1, %v121_v31 }
 0x126   :  { %v361_v56 = vpop.f32.mrf.mxu0 }
 0x12b   :  { %938 = vmatmul.msk.f32.gmra.mxu2 %vm132_vm1, %v125_v33  ;;  %927 = vmatmul.msk.f32.gmra.mxu3 %vm132_vm1, %v118_v34 }
 0x12c   :  { %935 = vmatmul.msk.f32.gmra.mxu1 %vm132_vm1, %v122_v35 }
 0x12e   :  { %v364_v63 = vpop.f32.mrf.mxu0 }
 0x133   :  { %939 = vmatmul.msk.f32.gmra.mxu2 %vm132_vm1, %v126_v36  ;;  %928 = vmatmul.msk.f32.gmra.mxu3 %vm132_vm1, %v119_v37 }
 0x134   :  { %936 = vmatmul.msk.f32.gmra.mxu1 %vm132_vm1, %v123_v38 }
 0x136   :  { %v367_v10 = vpop.f32.mrf.mxu0 }
 0x13b   :  { %940 = vmatmul.msk.f32.gmra.mxu2 %vm132_vm1, %v127_v39  ;;  %941 = vmatmul.msk.f32.vlgmr.msra.gmra.mxu3 %vm132_vm1, %v1128_v22 }
 0x13c   :  { %949 = vmatmul.msk.f32.vlgmr.msrb.gmra.mxu1 %vm132_vm1, %v120_v26 }
 0x13e   :  { %v370_v21 = vpop.f32.mrf.mxu0 }
 0x143   :  { %942 = vmatmul.msk.f32.gmra.mxu3 %vm132_vm1, %v117_v29  ;;  %953 = vmatmul.msk.f32.vlgmr.msrb.gmra.mxu2 %vm132_vm1, %v124_v28 }
 0x144   :  { %950 = vmatmul.msk.f32.gmra.mxu1 %vm132_vm1, %v121_v31 }
 0x14b   :  { %943 = vmatmul.msk.f32.gmra.mxu3 %vm132_vm1, %v118_v34  ;;  %954 = vmatmul.msk.f32.gmra.mxu2 %vm132_vm1, %v125_v33 }
 0x14c   :  { %951 = vmatmul.msk.f32.gmra.mxu1 %vm132_vm1, %v122_v35  ;;  %v495_v35 = vpop.f32.mrf.mxu0 }
 0x153   :  { %944 = vmatmul.msk.f32.gmra.mxu3 %vm132_vm1, %v119_v37  ;;  %955 = vmatmul.msk.f32.gmra.mxu2 %vm132_vm1, %v126_v36 }
 0x154   :  { %952 = vmatmul.msk.f32.gmra.mxu1 %vm132_vm1, %v123_v38 }
 0x15b   :  { %956 = vmatmul.msk.f32.gmra.mxu2 %vm132_vm1, %v127_v39  ;;  %v498_v39 = vpop.f32.mrf.mxu0 }
 0x178   :  { %v247_v45 = vpop.f32.mrf.mxu1 }
 0x17e   :  { %v162_v46 = vpop.f32.mrf.mxu3 }
 0x17f   :  { %v204_v0 = vadd.f32 %v203_v42, %v162_v46 }
 0x181   :  { %v250_v47 = vpop.f32.mrf.mxu1  ;;  %v259_v3 = vadd.f32 %v247_v45, %v204_v0 }
 0x186   :  { %v295_v49 = vpop.f32.mrf.mxu2  ;;  %v165_v50 = vpop.f32.mrf.mxu3 }
 0x187   :  { %v307_v8 = vadd.f32 %v295_v49, %v259_v3  ;;  %v207_v9 = vadd.f32 %v206_v43, %v165_v50  ;;  %v501_v49 = vpop.f32.mrf.mxu0 }
 0x189   :  { %v253_v51 = vpop.f32.mrf.mxu1  ;;  %v260_v13 = vadd.f32 %v250_v47, %v207_v9 }
 0x18e   :  { %v298_v53 = vpop.f32.mrf.mxu2  ;;  %v168_v54 = vpop.f32.mrf.mxu3 }
 0x18f   :  { %v308_v18 = vadd.f32 %v298_v53, %v260_v13  ;;  %v210_v19 = vadd.f32 %v209_v48, %v168_v54 }
 0x191   :  { %v256_v55 = vpop.f32.mrf.mxu1  ;;  %v261_v22 = vadd.f32 %v253_v51, %v210_v19 }
 0x196   :  { %v301_v57 = vpop.f32.mrf.mxu2  ;;  %v171_v58 = vpop.f32.mrf.mxu3 }
 0x197   :  { %v309_v28 = vadd.f32 %v301_v57, %v261_v22  ;;  %v213_v29 = vadd.f32 %v212_v52, %v171_v58  ;;  %v504_v57 = vpop.f32.mrf.mxu0 }
 0x199   :  { %v393_v59 = vpop.f32.mrf.mxu1  ;;  %v262_v31 = vadd.f32 %v256_v55, %v213_v29 }
 0x19e   :  { %v304_v60 = vpop.f32.mrf.mxu2  ;;  %v332_v61 = vpop.f32.mrf.mxu3 }
 0x19f   :  { %v362_v62 = vadd.f32 %v361_v56, %v332_v61  ;;  %v310_v34 = vadd.f32 %v304_v60, %v262_v31 }
 0x1a1   :  { %v405_v1 = vadd.f32 %v393_v59, %v362_v62  ;;  %v396_v2 = vpop.f32.mrf.mxu1 }
 0x1a6   :  { %v429_v4 = vpop.f32.mrf.mxu2  ;;  %v335_v5 = vpop.f32.mrf.mxu3 }
 0x1a7   :  { %v441_v6 = vadd.f32 %v429_v4, %v405_v1  ;;  %v365_v7 = vadd.f32 %v364_v63, %v335_v5 }
 0x1a9   :  { %957 = vmatpush.xpose.msk.msrb.mxu3 %vm132_vm1, %v441_v6  ;;  %v406_v11 = vadd.f32 %v396_v2, %v365_v7  ;;  %v399_v12 = vpop.f32.mrf.mxu1 }
 0x1ac   :  { %958 = vmatmul.msk.f32.vlgmr.msrb.gmra.mxu3 %vm132_vm1, %v307_v8 }
 0x1ae   :  { %v432_v14 = vpop.f32.mrf.mxu2  ;;  %v338_v15 = vpop.f32.mrf.mxu3 }
 0x1af   :  { %v442_v16 = vadd.f32 %v432_v14, %v406_v11  ;;  %v368_v17 = vadd.f32 %v367_v10, %v338_v15 }
 0x1b1   :  { %960 = vmatpush.xpose.msk.msra.mxu0 %vm132_vm1, %v442_v16  ;;  %v407_v20 = vadd.f32 %v399_v12, %v368_v17  ;;  %v402_v27 = vpop.f32.mrf.mxu1 }
 0x1b4   :  { %961 = vmatmul.msk.f32.vlgmr.msra.gmra.mxu0 %vm132_vm1, %v308_v18 }
 0x1b6   :  { %v435_v23 = vpop.f32.mrf.mxu2  ;;  %v341_v24 = vpop.f32.mrf.mxu3 }
 0x1b7   :  { %v443_v25 = vadd.f32 %v435_v23, %v407_v20  ;;  %v371_v26 = vadd.f32 %v370_v21, %v341_v24 }
 0x1b9   :  { %963 = vmatpush.xpose.msk.msra.mxu2 %vm132_vm1, %v443_v25  ;;  %v408_v30 = vadd.f32 %v402_v27, %v371_v26  ;;  %v527_v41 = vpop.f32.mrf.mxu1 }
 0x1bc   :  { %964 = vmatmul.msk.f32.vlgmr.msra.gmra.mxu2 %vm132_vm1, %v309_v28 }
 0x1be   :  { %v438_v32 = vpop.f32.mrf.mxu2  ;;  %v466_v36 = vpop.f32.mrf.mxu3 }
 0x1bf   :  { %v444_v33 = vadd.f32 %v438_v32, %v408_v30  ;;  %v496_v37 = vadd.f32 %v495_v35, %v466_v36 }
 0x1c1   :  { %966 = vmatpush.xpose.msk.msrb.mxu0 %vm132_vm1, %v444_v33  ;;  %v539_v42 = vadd.f32 %v527_v41, %v496_v37  ;;  %v530_v46 = vpop.f32.mrf.mxu1 }
 0x1c4   :  { %967 = vmatmul.msk.f32.vlgmr.msrb.gmra.mxu0 %vm132_vm1, %v310_v34 }
 0x1c6   :  { %v563_v38 = vpop.f32.mrf.mxu2  ;;  %v469_v40 = vpop.f32.mrf.mxu3 }
 0x1c7   :  { %v575_v43 = vadd.f32 %v563_v38, %v539_v42  ;;  %v499_v44 = vadd.f32 %v498_v39, %v469_v40 }
 0x1c9   :  { %647 = vmatpush.msra.mxu3 %v575_v43  ;;  %v540_v47 = vadd.f32 %v530_v46, %v499_v44  ;;  %v533_v53 = vpop.f32.mrf.mxu1 }
 0x1ce   :  { %v566_v45 = vpop.f32.mrf.mxu2  ;;  %v472_v48 = vpop.f32.mrf.mxu3 }
 0x1cf   :  { %v576_v50 = vadd.f32 %v566_v45, %v540_v47  ;;  %v502_v51 = vadd.f32 %v501_v49, %v472_v48 }
 0x1d1   :  { %721 = vmatpush.msra.mxu1 %v576_v50  ;;  %v541_v54 = vadd.f32 %v533_v53, %v502_v51  ;;  %v536_v60 = vpop.f32.mrf.mxu1 }
 0x1d6   :  { %v569_v52 = vpop.f32.mrf.mxu2  ;;  %v475_v56 = vpop.f32.mrf.mxu3 }
 0x1d7   :  { %v577_v55 = vadd.f32 %v569_v52, %v541_v54  ;;  %v505_v58 = vadd.f32 %v504_v57, %v475_v56 }
 0x1d9   :  { %800 = vmatpush.msrb.mxu3 %v577_v55  ;;  %v542_v61 = vadd.f32 %v536_v60, %v505_v58 }
 0x1de   :  { %v572_v59 = vpop.f32.mrf.mxu2 }
 0x1df   :  { %v578_v62 = vadd.f32 %v572_v59, %v542_v61 }
 0x1e1   :  { %879 = vmatpush.msrb.mxu1 %v578_v62 }
 0x22f   :  { %v602_v63 = vpop.f32.mrf.mxu3 }
 0x230   :  { %v605_v0 = vsel %vm132_vm1, %v602_v63, -inf }
 0x231   :  { %v676_v1 = vpop.f32.mrf.mxu0  ;;  %606 = vmax.xlane.f32.xlu0 %v605_v0 }
 0x232   :  { %v679_v2 = vsel %vm132_vm1, %v676_v1, -inf }
 0x233   :  { %680 = vmax.xlane.f32.xlu1 %v679_v2 }
 0x23f   :  { %v755_v3 = vpop.f32.mrf.mxu2 }
 0x240   :  { %v758_v4 = vsel %vm132_vm1, %v755_v3, -inf }
 0x241   :  { %759 = vmax.xlane.f32.xlu2 %v758_v4  ;;  %v834_v5 = vpop.f32.mrf.mxu0 }
 0x242   :  { %v837_v6 = vsel %vm132_vm1, %v834_v5, -inf }
 0x249   :  { %838 = vmax.xlane.f32.xlu2 %v837_v6 }
 0x2a4   :  { %v607_v7 = vpop.xlane.xlu0 %606 }
 0x2a5   :  { %v608_v8 = vsub.f32 %v602_v63, %v607_v7 }
 0x2a6   :  { %v681_v9 = vpop.xlane.xlu1 %680 }
 0x2a7   :  { %v609_v10 = vmul.f32 1.442695, %v608_v8  ;;  %v682_v11 = vsub.f32 %v676_v1, %v681_v9 }
 0x2a9   :  { %976 = vpow2.f32 %v609_v10  ;;  %v683_v12 = vmul.f32 1.442695, %v682_v11 }
 0x2ab   :  { %978 = vpow2.f32 %v683_v12 }
 0x2af   :  { %v977_v13 = vpop.eup %976 }
 0x2b0   :  { %v611_v14 = vsel %vm132_vm1, %v977_v13, 0.0 }
 0x2b1   :  { %v979_v15 = vpop.eup %978  ;;  %612 = vadd.xlane.f32.xlu0 %v611_v14 }
 0x2b2   :  { %v685_v16 = vsel %vm132_vm1, %v979_v15, 0.0 }
 0x2b3   :  { %686 = vadd.xlane.f32.xlu1 %v685_v16 }
 0x2b4   :  { %v760_v17 = vpop.xlane.xlu2 %759 }
 0x2b5   :  { %v761_v18 = vsub.f32 %v755_v3, %v760_v17 }
 0x2b7   :  { %v762_v19 = vmul.f32 1.442695, %v761_v18 }
 0x2b9   :  { %980 = vpow2.f32 %v762_v19 }
 0x2bc   :  { %v839_v20 = vpop.xlane.xlu2 %838 }
 0x2bd   :  { %v840_v21 = vsub.f32 %v834_v5, %v839_v20 }
 0x2bf   :  { %v1228_v22 = vpop.eup %980  ;;  %v841_v23 = vmul.f32 1.442695, %v840_v21 }
 0x2c0   :  { %v764_v24 = vsel %vm132_vm1, %v1228_v22, 0.0 }
 0x2c1   :  { %982 = vpow2.f32 %v841_v23  ;;  %765 = vadd.xlane.f32.xlu2 %v764_v24 }
 0x2c7   :  { %v1232_v25 = vpop.eup %982 }
 0x2c8   :  { %v843_v26 = vsel %vm132_vm1, %v1232_v25, 0.0 }
 0x2c9   :  { %844 = vadd.xlane.f32.xlu0 %v843_v26 }
 0x324   :  { %v613_v27 = vpop.xlane.xlu0 %612 }
 0x325   :  { %984 = vrcp.f32 %v613_v27  ;;  %v625_v34 = vand.u32 2147483648, %v613_v27  ;;  %v623_v36 = vand.u32 2147483647, %v613_v27  ;;  %vm619_vm3 = vweird.f32 %v613_v27 }
 0x326   :  { %v687_v28 = vpop.xlane.xlu1 %686 }
 0x327   :  { %986 = vrcp.f32 %v687_v28  ;;  %v699_v38 = vand.u32 2147483648, %v687_v28  ;;  %v697_v41 = vand.u32 2147483647, %v687_v28  ;;  %v626_v42 = vor.u32 1.1754944e-38, %v625_v34 }
 0x328   :  { %vm624_vm6 = vcmp.eq.f32.partialorder %v623_v36, 8.507059e+37  ;;  %vm693_vm7 = vweird.f32 %v687_v28 }
 0x329   :  { %v700_v47 = vor.u32 1.1754944e-38, %v699_v38  ;;  %vm698_vm9 = vcmp.eq.f32.partialorder %v697_v41, 8.507059e+37 }
 0x32b   :  { %v985_v29 = vpop.eup %984 }
 0x32c   :  { %v615_v30 = vmul.f32 %v985_v29, %v613_v27  ;;  %vm620_vm2 = vweird.f32 %v985_v29 }
 0x32d   :  { %v987_v31 = vpop.eup %986  ;;  %vm621_vm5 = vmor %vm619_vm3, %vm620_vm2  ;;  %vm730_vm3 = vcmask 130112  }
 0x32e   :  { %v616_v32 = vsub.f32 1.0, %v615_v30  ;;  %v689_v33 = vmul.f32 %v987_v31, %v687_v28  ;;  %vm694_vm4 = vweird.f32 %v987_v31 }
 0x32f   :  { %vm695_vm8 = vmor %vm693_vm7, %vm694_vm4  ;;  %vm809_vm4 = vcmask 195712  }
 0x330   :  { %v617_v35 = vmul.f32 %v985_v29, %v616_v32  ;;  %v690_v37 = vsub.f32 1.0, %v689_v33 }
 0x332   :  { %v618_v39 = vadd.f32 %v985_v29, %v617_v35  ;;  %v691_v40 = vmul.f32 %v987_v31, %v690_v37 }
 0x334   :  { %v622_v43 = vsel %vm621_vm5, %v985_v29, %v618_v39  ;;  %v692_v44 = vadd.f32 %v987_v31, %v691_v40  ;;  %v766_v45 = vpop.xlane.xlu2 %765  ;;  %vm888_vm5 = vcmask 261312  }
 0x335   :  { %v627_v46 = vsel %vm624_vm6, %v626_v42, %v622_v43  ;;  %988 = vrcp.f32 %v766_v45  ;;  %v778_v56 = vand.u32 2147483648, %v766_v45  ;;  %v776_v58 = vand.u32 2147483647, %v766_v45 }
 0x336   :  { %v696_v48 = vsel %vm695_vm8, %v987_v31, %v692_v44  ;;  %v628_v49 = vmul.f32 %v977_v13, %v627_v46  ;;  %vm772_vm11 = vweird.f32 %v766_v45 }
 0x337   :  { %v701_v50 = vsel %vm698_vm9, %v700_v47, %v696_v48  ;;  %v779_v61 = vor.u32 1.1754944e-38, %v778_v56  ;;  %vm777_vm13 = vcmp.eq.f32.partialorder %v776_v58, 8.507059e+37 }
 0x338   :  { %959 = vmatmul.msk.f32.vlgmr.msra.gmra.mxu3 %vm132_vm1, %v628_v49  ;;  %v702_v51 = vmul.f32 %v979_v15, %v701_v50 }
 0x33a   :  { %962 = vmatmul.msk.f32.vlgmr.msra.gmra.mxu1 %vm132_vm1, %v702_v51 }
 0x33b   :  { %v989_v52 = vpop.eup %988 }
 0x33c   :  { %v768_v53 = vmul.f32 %v989_v52, %v766_v45  ;;  %v845_v54 = vpop.xlane.xlu0 %844  ;;  %vm773_vm10 = vweird.f32 %v989_v52 }
 0x33d   :  { %990 = vrcp.f32 %v845_v54  ;;  %vm774_vm12 = vmor %vm772_vm11, %vm773_vm10  ;;  %v857_v3 = vand.u32 2147483648, %v845_v54  ;;  %v855_v5 = vand.u32 2147483647, %v845_v54  ;;  %vm851_vm15 = vweird.f32 %v845_v54 }
 0x33e   :  { %v769_v55 = vsub.f32 1.0, %v768_v53 }
 0x33f   :  { %v858_v7 = vor.u32 1.1754944e-38, %v857_v3  ;;  %vm856_vm2 = vcmp.eq.f32.partialorder %v855_v5, 8.507059e+37 }
 0x340   :  { %v770_v57 = vmul.f32 %v989_v52, %v769_v55 }
 0x342   :  { %v771_v59 = vadd.f32 %v989_v52, %v770_v57 }
 0x343   :  { %v991_v60 = vpop.eup %990 }
 0x344   :  { %v775_v62 = vsel %vm774_vm12, %v989_v52, %v771_v59  ;;  %v847_v63 = vmul.f32 %v991_v60, %v845_v54  ;;  %vm852_vm14 = vweird.f32 %v991_v60 }
 0x345   :  { %v780_v0 = vsel %vm777_vm13, %v779_v61, %v775_v62  ;;  %vm853_vm0 = vmor %vm851_vm15, %vm852_vm14 }
 0x346   :  { %v848_v1 = vsub.f32 1.0, %v847_v63  ;;  %v781_v2 = vmul.f32 %v1228_v22, %v780_v0 }
 0x348   :  { %v849_v4 = vmul.f32 %v991_v60, %v848_v1  ;;  %965 = vmatmul.msk.f32.vlgmr.msrb.gmra.mxu3 %vm132_vm1, %v781_v2 }
 0x34a   :  { %v850_v6 = vadd.f32 %v991_v60, %v849_v4 }
 0x34c   :  { %v854_v8 = vsel %vm853_vm0, %v991_v60, %v850_v6 }
 0x34d   :  { %v859_v9 = vsel %vm856_vm2, %v858_v7, %v854_v8 }
 0x34e   :  { %v860_v10 = vmul.f32 %v1232_v25, %v859_v9 }
 0x350   :  { %968 = vmatmul.msk.f32.vlgmr.msrb.gmra.mxu1 %vm132_vm1, %v860_v10 }
 0x3b7   :  { %v723_v11 = vpop.f32.mrf.mxu1 }
 0x3b8   :  { %727 = vrot.lane.b32.xlu1 %v723_v11, %s1021_s6 }
 0x3bb   :  { %v649_v12 = vpop.f32.mrf.mxu3 }
 0x3bc   :  { %652 = vst.msk [vmem:[#allocation2] sm:$0xff] %vm132_vm1, %v649_v12 }
 0x3cb   :  { %v802_v13 = vpop.f32.mrf.mxu3 }
 0x3cc   :  { %806 = vrot.lane.b32.xlu2 %v802_v13, %s1022_s8 }
 0x3cd   :  { %v881_v14 = vpop.f32.mrf.mxu1 }
 0x3ce   :  { %885 = vrot.lane.b32.xlu0 %v881_v14, %s1023_s9 }
 0x426   :  { %v807_v16 = vpop.permute.xlu2 %806 }
 0x42a   :  { %v728_v15 = vpop.permute.xlu1 %727 }
 0x42b   :  { %731 = vst.msk [vmem:[#allocation2] sm:$0xff] %vm730_vm3, %v728_v15 }
 0x42c   :  { %810 = vst.msk [vmem:[#allocation2] sm:$0xff] %vm809_vm4, %v807_v16 }
 0x440   :  { %v886_v17 = vpop.permute.xlu0 %885 }
 0x441   :  { %889 = vst.msk [vmem:[#allocation2] sm:$0xff] %vm888_vm5, %v886_v17 }
 0x442   :  { %900 = dma.vmem_to_hbm [thread:$0]  %s896_s11, 128, %s898_s14, [#allocation3]  }
 0x443   :  { %1016 = dma.done.wait [#allocation3], 128  }
 0x444   :  { %1017 = vsyncadd [#allocation3], 4294967168 }
 0x445   :  { %905 = vsyncpa [#allocation3], 1 }

</bundles_post_ra>
